<compile_context>
chip_gen: v6e
topology: v6e:2x2x1
jax: 0.10.0
libtpu: 0.0.40
codegen_flags: <defaults>
</compile_context>

<pallas_src>
import jax
import jax.numpy as jnp
from jax.experimental import pallas as pl
from jax.experimental.pallas import tpu as pltpu


def _round_up(x, m):
    return ((x + m - 1) // m) * m


# ---------------------------------------------------------------------------
# Pallas kernel: one folded GEMM + bias + ReLU, lane-dense output.
# ---------------------------------------------------------------------------
def _gemm_bias_relu_kernel(w_ref, x_ref, b_ref, o_ref):
    # w_ref : (CO, Kd)  bf16   conv weights, all taps/channels folded into Kd
    # x_ref : (Kd, TM)  bf16   im2col patches, output pixels on the lane axis
    # b_ref : (CO, 1)   f32
    # o_ref : (CO, TM)  f32
    acc = jnp.dot(w_ref[...], x_ref[...], preferred_element_type=jnp.float32)
    o_ref[...] = jnp.maximum(acc + b_ref[...], 0.0)


def conv2d_relu(x_nhwc, w_hwio, bias, *, tm=256):
    """relu(Conv2d(x.permute(0,3,1,2))) of the PyTorch `conv2d` module (bn=False).

    x_nhwc : (N, H, W, Cin)   -- channels-last, as received by forward()
    w_hwio : (KH, KW, Cin, CO)
    bias   : (CO,)
    returns: (N, CO, HO, WO)  -- NCHW, like nn.Conv2d (VALID padding, stride 1)
    """
    N, H, W, C = x_nhwc.shape
    KH, KW, Cin, CO = w_hwio.shape
    assert Cin == C
    HO, WO = H - KH + 1, W - KW + 1
    Kd = KH * KW * C
    M = N * HO * WO

    # --- im2col (layout prep) in the wrapper: fold taps + batch into one GEMM.
    cols = []
    for dh in range(KH):
        for dw in range(KW):
            cols.append(x_nhwc[:, dh:dh + HO, dw:dw + WO, :])
    patches = jnp.concatenate(cols, axis=-1)              # (N, HO, WO, Kd)
    patches = patches.reshape(M, Kd)                      # rows ordered (n, ho, wo)

    # --- lane-dense operands: contraction dim on sublanes, M on lanes.
    tm_eff = min(tm, _round_up(M, 128))
    m_pad = _round_up(M, tm_eff)
    x_t = jnp.pad(patches.T.astype(jnp.bfloat16), ((0, 0), (0, m_pad - M)))
    w_t = w_hwio.reshape(Kd, CO).T.astype(jnp.bfloat16)   # (CO, Kd)
    b2 = bias.reshape(CO, 1).astype(jnp.float32)

    out_t = pl.pallas_call(
        _gemm_bias_relu_kernel,
        out_shape=jax.ShapeDtypeStruct((CO, m_pad), jnp.float32),
        grid_spec=pltpu.PrefetchScalarGridSpec(
            num_scalar_prefetch=0,
            grid=(m_pad // tm_eff,),
            in_specs=[
                pl.BlockSpec((CO, Kd), lambda m: (0, 0)),
                pl.BlockSpec((Kd, tm_eff), lambda m: (0, m)),
                pl.BlockSpec((CO, 1), lambda m: (0, 0)),
            ],
            out_specs=pl.BlockSpec((CO, tm_eff), lambda m: (0, m)),
        ),
        compiler_params=pltpu.CompilerParams(
            dimension_semantics=("parallel",)),
    )(w_t, x_t, b2)

    out = out_t[:, :M].reshape(CO, N, HO, WO)
    return jnp.transpose(out, (1, 0, 2, 3))               # -> NCHW


# ---------------------------------------------------------------------------
# Plain-JAX reference for the conv (same bf16-quantized inputs as the kernel).
# ---------------------------------------------------------------------------
def conv2d_relu_reference(x_nhwc, w_hwio, bias):
    xq = x_nhwc.astype(jnp.bfloat16).astype(jnp.float32)
    wq = w_hwio.astype(jnp.bfloat16).astype(jnp.float32)
    y = jax.lax.conv_general_dilated(
        xq, wq, window_strides=(1, 1), padding="VALID",
        dimension_numbers=("NHWC", "HWIO", "NHWC"),
        precision=jax.lax.Precision.HIGHEST)
    y = jax.nn.relu(y + bias[None, None, None, :])
    return jnp.transpose(y, (0, 3, 1, 2))


# ---------------------------------------------------------------------------
# SpiderConv forward (gather + Taylor expansion in plain JAX, conv via Pallas).
# ---------------------------------------------------------------------------
def index_points(points, idx):
    """points: (B, Npts, C), idx: (B, ...) -> (B, ..., C). Same as the PyTorch helper."""
    B = points.shape[0]
    batch_idx = jnp.arange(B).reshape((B,) + (1,) * (idx.ndim - 1))
    return points[batch_idx, idx]


_MONOMIALS = ("x", "y", "z", "xyz", "xy", "yz", "xz", "1",
              "xx", "yy", "zz", "xxy", "xyy", "xxz", "xzz",
              "yyz", "yzz", "xxx", "yyy", "zzz")


def _taylor_g_d(delta, taylor_w):
    """delta: (B, S, K, 3); taylor_w: (20, TC) rows in _MONOMIALS order -> (B, S, K, TC)."""
    X = delta[..., 0:1]
    Y = delta[..., 1:2]
    Z = delta[..., 2:3]
    one = jnp.ones_like(X)
    monos = [X, Y, Z, X * Y * Z, X * Y, Y * Z, X * Z, one,
             X * X, Y * Y, Z * Z, X * X * Y, X * Y * Y, X * X * Z, X * Z * Z,
             Y * Y * Z, Y * Z * Z, X * X * X, Y * Y * Y, Z * Z * Z]
    g_d = jnp.zeros(delta.shape[:-1] + (taylor_w.shape[-1],), jnp.float32)
    for j, m in enumerate(monos):
        g_d = g_d + m * taylor_w[j]
    return g_d


def spiderconv_forward(feat, idx, delta, taylor_w, conv_w_hwio, conv_b, *,
                       conv_fn=conv2d_relu):
    """SpiderConv.forward (bn=False): gather -> Taylor expansion -> conv2d((1,K)) -> relu."""
    grouped = index_points(feat, idx)                      # (B, S, K, Cin)
    B, S, K, Cin = grouped.shape
    g_d = _taylor_g_d(delta, taylor_w)                     # (B, S, K, TC)
    TC = g_d.shape[-1]
    expanded = grouped[..., :, None] * g_d[..., None, :]   # (B, S, K, Cin, TC)
    expanded = expanded.reshape(B, S, K, Cin * TC)
    out_nchw = conv_fn(expanded, conv_w_hwio, conv_b)      # (B, CO, S, 1)
    return jnp.squeeze(out_nchw, -1).transpose(0, 2, 1)    # (B, S, CO)


if __name__ == "__main__":
    key = jax.random.PRNGKey(0)
    k1, k2, k3, k4, k5, k6, k7 = jax.random.split(key, 7)

    # ---- check 1: the conv2d sub-module at the previously reviewed shapes ----
    N, H, W, Cin = 2, 16, 16, 4
    Cout, KH, KW = 8, 3, 3
    x = jax.random.normal(k1, (N, H, W, Cin), dtype=jnp.float32)
    w_pt = jax.random.normal(k2, (Cout, Cin, KH, KW), dtype=jnp.float32) * 0.1
    b = jax.random.normal(k3, (Cout,), dtype=jnp.float32) * 0.1
    w_hwio = jnp.transpose(w_pt, (2, 3, 1, 0))             # OIHW -> HWIO
    out = jax.block_until_ready(conv2d_relu(x, w_hwio, b))
    ref = conv2d_relu_reference(x, w_hwio, b)
    assert out.shape == (N, Cout, H - KH + 1, W - KW + 1)
    assert jnp.allclose(out, ref, atol=1e-3, rtol=1e-3), \
        float(jnp.max(jnp.abs(out - ref)))

    # ---- check 2: full SpiderConv forward ------------------------------------
    B, Npts, S, K_knn = 2, 128, 64, 20
    in_conv, TC, num_conv = 4, 5, 32                       # conv2d(in_conv*5, num_conv, (1,20))
    feat = jax.random.normal(k4, (B, Npts, in_conv), dtype=jnp.float32)
    idx = jax.random.randint(k5, (B, S, K_knn), 0, Npts)
    delta = jax.random.normal(k6, (B, S, K_knn, 3), dtype=jnp.float32) * 0.2
    kw1, kw2, kw3 = jax.random.split(k7, 3)
    taylor_w = jax.random.normal(kw1, (20, TC), dtype=jnp.float32) * 0.1
    taylor_w = taylor_w.at[_MONOMIALS.index("1")].set(0.0)  # the 'bias' term is zero-init
    cw_pt = jax.random.normal(kw2, (num_conv, in_conv * TC, 1, K_knn),
                              dtype=jnp.float32) * 0.05     # PyTorch OIHW layout
    cb = jax.random.normal(kw3, (num_conv,), dtype=jnp.float32) * 0.1
    cw_hwio = jnp.transpose(cw_pt, (2, 3, 1, 0))             # (1, K_knn, Cin*TC, CO)

    sp_out = jax.block_until_ready(
        spiderconv_forward(feat, idx, delta, taylor_w, cw_hwio, cb,
                           conv_fn=conv2d_relu))
    sp_ref = spiderconv_forward(feat, idx, delta, taylor_w, cw_hwio, cb,
                                conv_fn=conv2d_relu_reference)
    assert sp_out.shape == (B, S, num_conv)
    assert jnp.allclose(sp_out, sp_ref, atol=1e-3, rtol=1e-3), \
        float(jnp.max(jnp.abs(sp_out - sp_ref)))

    print("KERNEL_OK")
</pallas_src>

<mosaic_0001>
module attributes {stable_mosaic.version = 11 : i64} {
  func.func @_gemm_bias_relu_kernel(%arg0: i32, %arg1: memref<8x36xbf16, #tpu.memory_space<vmem>>, %arg2: memref<36x256xbf16, #tpu.memory_space<vmem>>, %arg3: memref<8x1xf32, #tpu.memory_space<vmem>>, %arg4: memref<8x256xf32, #tpu.memory_space<vmem>>) attributes {dimension_semantics = [#tpu.dimension_semantics<parallel>], iteration_bounds = array<i64: 2>, scalar_prefetch = 0 : i64, scratch_operands = 0 : i64, tpu.core_type = #tpu.core_type<tc>, window_params = [{pipeline_mode = #tpu.pipeline_mode<synchronous>, transform_indices = @transform_0, window_bounds = array<i64: 8, 36>}, {transform_indices = @transform_1, window_bounds = array<i64: 36, 256>}, {pipeline_mode = #tpu.pipeline_mode<synchronous>, transform_indices = @transform_2, window_bounds = array<i64: 8, 1>}, {transform_indices = @transform_3, window_bounds = array<i64: 8, 256>}]} {
    %c0 = arith.constant 0 : index
    %c0_0 = arith.constant 0 : index
    %0 = vector.load %arg1[%c0, %c0_0] : memref<8x36xbf16, #tpu.memory_space<vmem>>, vector<8x36xbf16>
    %c0_1 = arith.constant 0 : index
    %c0_2 = arith.constant 0 : index
    %1 = vector.load %arg2[%c0_1, %c0_2] : memref<36x256xbf16, #tpu.memory_space<vmem>>, vector<36x256xbf16>
    %cst = arith.constant dense<0.000000e+00> : vector<8x256xf32>
    %2 = tpu.matmul %0, %1, %cst {dimension_numbers = #tpu.dot_dimension_numbers<[1], [0], [0], [1], [0, 0, 1, 1], [], []>} : vector<8x36xbf16>, vector<36x256xbf16>, vector<8x256xf32> -> vector<8x256xf32>
    %c0_3 = arith.constant 0 : index
    %c0_4 = arith.constant 0 : index
    %3 = vector.load %arg3[%c0_3, %c0_4] : memref<8x1xf32, #tpu.memory_space<vmem>>, vector<8x1xf32>
    %4 = vector.broadcast %3 : vector<8x1xf32> to vector<8x256xf32>
    %5 = arith.addf %2, %4 : vector<8x256xf32>
    %cst_5 = arith.constant 0.000000e+00 : f32
    %6 = vector.broadcast %cst_5 : f32 to vector<8x256xf32>
    %7 = arith.maximumf %5, %6 : vector<8x256xf32>
    %c0_6 = arith.constant 0 : index
    %c0_7 = arith.constant 0 : index
    %8 = vector.load %arg4[%c0_6, %c0_7] : memref<8x256xf32, #tpu.memory_space<vmem>>, vector<8x256xf32>
    tpu.vector_store %arg4[%c0_6, %c0_7], %7 {strides = array<i32>} : memref<8x256xf32, #tpu.memory_space<vmem>>, vector<8x256xf32>,
    return
  }
  func.func @transform_0(%arg0: i32) -> (i32, i32) {
    %c0_i32 = arith.constant 0 : i32
    %c0_i32_0 = arith.constant 0 : i32
    %c0_i32_1 = arith.constant 0 : i32
    return %c0_i32, %c0_i32_0 : i32, i32
  }
  func.func @transform_1(%arg0: i32) -> (i32, i32) {
    %c0_i32 = arith.constant 0 : i32
    %c0_i32_0 = arith.constant 0 : i32
    return %c0_i32, %arg0 : i32, i32
  }
  func.func @transform_2(%arg0: i32) -> (i32, i32) {
    %c0_i32 = arith.constant 0 : i32
    %c0_i32_0 = arith.constant 0 : i32
    %c0_i32_1 = arith.constant 0 : i32
    return %c0_i32, %c0_i32_0 : i32, i32
  }
  func.func @transform_3(%arg0: i32) -> (i32, i32) {
    %c0_i32 = arith.constant 0 : i32
    %c0_i32_0 = arith.constant 0 : i32
    return %c0_i32, %arg0 : i32, i32
  }
}

</mosaic_0001>

<bundles_post_ra>
// kernel: tpu_custom_call.1
= control target key start
LH: loop header
LB: loop body
LE: loop exit
PB: predicated region body
PF: predicated region fallthrough
CT: control target
= control target key end

     0   :  { %8 = vsyncpa [#allocation3], 0  ;;  %s722_s0 = inlined_call_operand.vmem [shape: bf16[8,36], index: 0, kind: input, shape index: {}]   ;;  %s723_s1 = inlined_call_operand.hbm [shape: bf16[36,512], index: 1, kind: input, shape index: {}]   ;;  %s724_s2 = inlined_call_operand.vmem [shape: f32[8,1], index: 2, kind: input, shape index: {}]   ;;  %s725_s3 = inlined_call_operand.hbm [shape: f32[8,512], index: 3, kind: output, shape index: {}]  }
   0x1   :  { %10 = vsyncpa [#allocation3 + $0x1], 0 }
   0x2   :  { %11 = vsyncpa [#allocation4], 0 }
   0x3   :  { %13 = vsyncpa [#allocation4 + $0x1], 0  ;;  %s573_s12 = smov 0   ;;  %s575_s13 = smov 0  }
   0x4   :  { %s577_s14 = smov 0   ;;  %s579_s15 = smov 0  }
   0x5 LB: > { %s594_s16 = sadd.s32 4294967295, %s545_s15   ;;  %s370_s17 = sadd.s32 4294967294, %s545_s15   ;;  %s545_s15 = sphi %s579_s15, %s740_s15   ;;  %s541_s14 = sphi %s577_s14, %s739_s14   ;;  %s537_s13 = sphi %s575_s13, %s738_s13   ;;  %s533_s12 = sphi %s573_s12, %s737_s12  }
   0x6   : > { %s598_s18 = sadd.s32 1, %s545_s15   ;;  %s47_s19 = sadd.s32 1, %s541_s14 }
   0x7   : > { %s44_s20 = ssub.s32 %s545_s15, %s598_s18  ;;  %p54_p0 = scmp.ne.s32.totalorder %s541_s14, %s537_s13 }
   0x8   : > { %p45_p1 = scmp.eq.s32.totalorder %s44_s20, 0  ;;  %p55_p2 = scmp.eq.s32.totalorder %s545_s15, 0 }
   0x9   : > { %p60_p3 = scmp.ne.s32.totalorder %s537_s13, %s533_s12  ;;  %p61_p4 = scmp.eq.s32.totalorder %s594_s16, 0 }
   0xa   : > { %s610_s21 = scalar_select %p45_p1, %s541_s14, %s47_s19  }
   0xb   : > { %p56_p5 = por %p55_p2, %p54_p0  ;;  %p612_p6 = por %p61_p4, %p60_p3 }
   0xc   : > { %p105_p7 = scmp.eq.s32.totalorder %s594_s16, 1  ;;  %p111_p8 = scmp.eq.s32.totalorder %s370_s17, 1 }
   0xd   : > { %s728_s22 = scalar_select %p612_p6, 1, 0 }
   0xe   : > { %p406_p10 = scmp.lt.s32.totalorder %s545_s15, 2  ;;  %p619_p11 = por %p105_p7, %p54_p0 }
   0xf   : > { %p623_p12 = por %p111_p8, %p60_p3  ;;  %s137_s25 = sand.u32 1, %s541_s14  }
  0x10   : > { %s729_s23 = scalar_select %p619_p11, 1, 0 }
  0x11   : > { %s730_s24 = scalar_select %p623_p12, 1, 0 }
  0x12   : > { %s390_s26 = sshll.u32 %s545_s15, 7  ;;  %s392_s27 = smul.u32 40, %s137_s25 }
  0x13   : > { %s632_s30 = scalar_lea.hbm %s723_s1, %s390_s26  ;;  %p634_p13 = pnand %p406_p10, %p56_p5 }
  0x14   : > { %s141_s5 = scalar_lea.vmem [#allocation2], %s392_s27  ;;  %s641_s7 = scalar_lea.sflag [#allocation3], %s137_s25 }
  0x15   : > { %s148_s6 = sshll.u32 %s141_s5, 4  ;;  %s453_s8 = scalar_lea.hbm %s632_s30, 640  ;;  %s638_s6 = int_to_ptr.vmem [resolvable:$true] %s148_s6 }
  0x16   : > { %p454_p1 = scmp.ne.s32.totalorder %s632_s30, %s453_s8  ;;  %p455_p2 = pneg %p634_p13 }
  0x17   : > { %s458_s11 = scalar_lea.hbm %s723_s1, 1280  ;;  %p459_p5 = scmp.lt.s32.totalorder %s632_s30, %s723_s1 }
  0x18   : > { %p456_p3 = pnand %p455_p2, %p454_p1  ;;  %p460_p7 = scmp.lt.s32.totalorder %s458_s11, %s453_s8 }
  0x1a   : > { %p457_p4 = pneg %p456_p3  ;;  %p461_p8 = por %p460_p7, %p459_p5 }
  0x1c   : > { %p462_p10 = pnand %p461_p8, %p457_p4 }
  0x1e   : > { %465 = shalt.err (!%p462_p10)
}
  0x1f   : > { %s466_s20 = scalar_lea.vmem %s638_s6, 640  ;;  %s547_s25 = smov [#allocation2]  }
  0x20   : > { %p467_p9 = scmp.ne.s32.totalorder %s638_s6, %s466_s20  ;;  %s471_s26 = sshll.u32 %s547_s25, 4  ;;  %s472_s26 = int_to_ptr.vmem [resolvable:$false] %s471_s26 }
  0x21   : > { %s473_s27 = scalar_lea.vmem %s472_s26, 1280  ;;  %p474_p3 = scmp.lt.s32.totalorder %s638_s6, %s472_s26 }
  0x22   : > { %p469_p0 = pnand %p467_p9, %p455_p2  ;;  %p475_p12 = scmp.lt.s32.totalorder %s473_s27, %s466_s20 }
  0x24   : > { %p470_p1 = pneg %p469_p0  ;;  %p476_p11 = por %p475_p12, %p474_p3 }
  0x26   : > { %p477_p6 = pnand %p476_p11, %p470_p1 }
  0x28   : > { %480 = shalt.err (!%p477_p6)
}
  0x29   : > { %s548_s28 = smov 256   ;;  %s549_s29 = smov 128  }
  0x2a   : > { %s550_s5 = smov 8   ;;  %p156_p9 = scmp.lt.s32.totalorder %s545_s15, 3 }
  0x2b   : > { %401 = dma.hbm_to_vmem [thread:$0]  (!%p634_p13), %s632_s30, 640, %s638_s6, %s641_s7, %s548_s28, %s549_s29, %s550_s5  }
  0x2c   : > { %p732_p0 = scmp.ge.s32.totalorder %s545_s15, 1 }
  0x2e   : > { %p157_p2 = pnand %p732_p0, %p156_p9 }
  0x2f   : > { %s666_s8 = sand.u32 (!%p157_p2), 1, %s537_s13   ;;  %p733_p6 = scmp.ne.s32.totalorder (!%p157_p2), %s728_s22, 0 }
  0x30   : > { %160 = sbr.rel (%p157_p2) target bundleno = 281 (0x119), region = 32  ;;  %s163_s10 = scalar_lea.sflag (!%p157_p2), [#allocation3], %s666_s8 }
  0x31   : > { %s393_s9 = smul.u32 (!%p157_p2), 40, %s666_s8 }
  0x33   : > { %s166_s11 = scalar_lea.vmem (!%p157_p2), [#allocation2], %s393_s9 }
  0x35   : > { %524 = dma.done.wait (%p733_p6), %s163_s10, 640  }
  0x36   : > { %526 = vsyncadd (%p733_p6), %s163_s10, 4294966656  ;;  %v551_v0 = vmov 0   ;;  %v197_v1 = vld [vmem:[%s166_s11 + $0x20] sm:$0x33]  ;;  %vm233_vm0 = vcmask 1041408   ;;  %vm229_vm1 = vcmask 293888  }
  0x37   : > { %272 = vmatprep.mubr.bf16.mxu0 %v551_v0  ;;  %444 = vset.pattern.permute.xlu0 %v551_v0  ;;  %v382_v2 = vcombine.high %v197_v1, %v197_v1  ;;  %v381_v3 = vcombine.low %v197_v1, %v197_v1  ;;  %v447_v4 = vld [vmem:[%s166_s11 + $0x14] ss:$8 sps:$4 sm:$0xff]   ;;  %v449_v7 = vld [vmem:[%s166_s11 + $0x10] ss:$8 sps:$4 sm:$0xff]   ;;  %v450_v8 = vld [vmem:[%s166_s11 + $0x4] ss:$8 sps:$4 sm:$0xff]  }
  0x38   : > { %v198_v6 = vld [vmem:[%s724_s2] sm:$0xff]  ;;  %s376_s7 = sshll.u32 %s666_s8, 4  ;;  %s391_s17 = sshll.u32 %s594_s16, 8 }
  0x39   : > { %383 = vmatprep.subr.msk.bf16.mxu0 %vm233_vm0, %v382_v2  ;;  %v235_v5 = vsel %vm233_vm0, %v381_v3, 0  ;;  %201 = vperm.xlu0 %444, %v198_v6   ;;  %v452_v9 = vld [vmem:[%s166_s11] ss:$8 sps:$4 sm:$0xff]   ;;  %s188_s19 = scalar_lea.vmem [#allocation5], %s376_s7  ;;  %s685_s27 = scalar_lea.hbm %s725_s3, %s391_s17 }
  0x3a   : > { %251 = vmatpush1.bf16.msra.mxu0 %v235_v5  ;;  %v192_v10 = vld [vmem:[%s722_s0] sm:$0xf]  ;;  %s300_s20 = sshll.u32 %s188_s19, 4  ;;  %s286_s28 = scalar_lea.sflag [#allocation4], %s666_s8  ;;  %s301_s20 = int_to_ptr.vmem [resolvable:$true] %s300_s20 }
  0x3b   : > { %252 = vmatprep.subr.bf16.mxu0 %v447_v4  ;;  %s481_s29 = scalar_lea.vmem %s301_s20, 256  ;;  %p734_p12 = scmp.ne.s32.totalorder %s729_s23, 0 }
  0x3c   : > { %p482_p11 = scmp.ne.s32.totalorder %s301_s20, %s481_s29  ;;  %s552_s16 = smov [#allocation5]  }
  0x3d   : > { %s485_s5 = sshll.u32 %s552_s16, 4  ;;  %s486_s5 = int_to_ptr.vmem [resolvable:$false] %s485_s5 }
  0x3e   : > { %253 = vmatpush1.bf16.msra.mxu0 %v449_v7  ;;  %p483_p13 = pnand %p482_p11, %p734_p12  ;;  %s487_s9 = scalar_lea.vmem %s486_s5, 512 }
  0x3f   : > { %254 = vmatprep.subr.bf16.mxu0 %v450_v8  ;;  %p488_p5 = scmp.lt.s32.totalorder %s301_s20, %s486_s5  ;;  %p489_p7 = scmp.lt.s32.totalorder %s487_s9, %s481_s29 }
  0x40   : > { %p484_p4 = pneg %p483_p13 }
  0x41   : > { %p490_p8 = por %p489_p7, %p488_p5 }
  0x42   : > { %255 = vmatpush1.bf16.msra.mxu0 %v452_v9 }
  0x43   : > { %p491_p10 = pnand %p490_p8, %p484_p4 }
  0x45   : > { %384 = vmatmul.mubr.msk.bf16.vlgmr.msra.gmra.mxu0 %vm229_vm1, %v192_v10 }
  0xb4   : > { %v202_v11 = vpop.permute.xlu0 %201 }
 0x105   : > { %v274_v12 = vpop.f32.mrf.mxu0 }
 0x106   : > { %v275_v13 = vadd.f32 %v274_v12, %v202_v11 }
 0x107   : > { %v276_v14 = vpop.f32.mrf.mxu0 }
 0x108   : > { %v281_v15 = vmax.f32 %v275_v13, 0.0  ;;  %v277_v16 = vadd.f32 %v276_v14, %v202_v11 }
 0x109   : > { %v278_v17 = vpop.f32.mrf.mxu0 }
 0x10a   : > { %283 = vst [vmem:[%s188_s19] sm:$0xff] %v281_v15  ;;  %v282_v18 = vmax.f32 %v277_v16, 0.0 }
 0x10b   : > { %v279_v19 = vpop.f32.mrf.mxu0 }
 0x10c   : > { %284 = vst [vmem:[%s188_s19 + $0x8] sm:$0xff] %v282_v18 }
 0x10d   : > { %494 = shalt.err (!%p491_p10)
}
 0x10e   : > { %s495_s10 = scalar_lea.hbm %s685_s27, 256  ;;  %s499_s30 = scalar_lea.hbm %s725_s3, 512 }
 0x10f   : > { %p496_p1 = scmp.ne.s32.totalorder %s685_s27, %s495_s10  ;;  %p500_p0 = scmp.lt.s32.totalorder %s685_s27, %s725_s3 }
 0x110   : > { %p501_p2 = scmp.lt.s32.totalorder %s499_s30, %s495_s10 }
 0x111   : > { %p497_p3 = pnand %p496_p1, %p734_p12 }
 0x112   : > { %p502_p6 = por %p501_p2, %p500_p0 }
 0x113   : > { %p498_p9 = pneg %p497_p3 }
 0x115   : > { %p503_p11 = pnand %p502_p6, %p498_p9 }
 0x117   : > { %506 = shalt.err (!%p503_p11)
}
 0x118   : > { %396 = dma.vmem_to_hbm [thread:$0]  (%p734_p12), %s301_s20, 256, %s685_s27, %s286_s28  }
 0x119 PF: > { %s312_s6 = sand.u32 1, %s533_s12   ;;  %p735_p13 = scmp.ne.s32.totalorder %s730_s24, 0 }
 0x11a   : > { %p736_p4 = scmp.ge.s32.totalorder %s545_s15, 2  ;;  %s313_s7 = scalar_lea.sflag [#allocation4], %s312_s6 }
 0x11c   : > { %p403_p5 = pnand %p736_p4, %p735_p13 }
 0x11e   : > { %p404_p7 = pneg %p403_p5 }
 0x120   : > { %528 = dma.done.wait (%p404_p7), %s313_s7, 256  }
 0x121   : > { %530 = vsyncadd (%p404_p7), %s313_s7, 4294967040  ;;  %p16_p8 = scmp.ge.s32.totalorder %s598_s18, 4   ;;  %s737_s12 = smov %s537_s13 }
 0x122   : > { %s738_s13 = smov %s541_s14  ;;  %s739_s14 = smov %s610_s21 }
 0x123   : > { %s740_s15 = smov %s598_s18  ;;  %18 = sbr.rel (!%p16_p8) target bundleno = 5 (0x5), region = 77 }
 0x128   :  { %318 = vsyncpa [#allocation3], 1 }
 0x129   :  { %320 = vsyncpa [#allocation3 + $0x1], 1 }
 0x12a   :  { %321 = vsyncpa [#allocation4], 1 }
 0x12b   :  { %323 = vsyncpa [#allocation4 + $0x1], 1 }

</bundles_post_ra>
